<compile_context>
chip_gen: v6e
topology: v6e:2x2x1
jax: 0.10.0
libtpu: 0.0.40
codegen_flags: <defaults>
</compile_context>

<pallas_src>
import jax
import jax.numpy as jnp
from jax.experimental import pallas as pl
from jax.experimental.pallas import tpu as pltpu


def _meanpool_conv_kernel(x_ref, t_ref, b_ref, o_ref):
    """One (batch tile, output-column tile) per grid step.

    x_ref : (4, bt, S_in)  four 2x2-pool taps; last axis is (h2, w2, cin) flattened
    t_ref : (S_in, tn)     block-Toeplitz conv matrix column tile (0.25 scale folded in)
    b_ref : (1, tn)        bias tiled over (h2, w2), f32
    o_ref : (bt, tn)       output tile; columns are (h2, w2, cout) flattened (lane dense)
    """
    pooled = x_ref[0] + x_ref[1] + x_ref[2] + x_ref[3]      # VPU; pool scale lives in T
    acc = jnp.dot(pooled, t_ref[...], preferred_element_type=jnp.float32)   # MXU
    o_ref[...] = (acc + b_ref[...]).astype(o_ref.dtype)


def _round_up(x, m):
    return (x + m - 1) // m * m


def _choose_batch_tiling(n, cap):
    """Sublane-aligned batch tile (multiple of 8) and padded batch size."""
    cap = max(8, (cap // 8) * 8)
    n8 = _round_up(n, 8)
    bt = min(cap, n8)
    # Give v7x's two TensorCores at least two batch steps when there is enough real work.
    if n8 >= 16 and n8 // bt < 2:
        bt = max(8, _round_up(n8 // 2, 8))
    return bt, _round_up(n, bt)


def _choose_col_tile(s_in, s_out, itemsize, budget_bytes=12 << 20):
    """Largest S_out column tile (128-multiple dividing s_out) whose T tile fits budget."""
    if s_in * s_out * itemsize <= budget_bytes or s_out % 128 != 0:
        # Small enough, or no 128-aligned divisor exists: keep T whole (correct; only
        # VMEM hungry when the post-pool spatial map is very large).
        return s_out
    tn = min(s_out, max(128, (budget_bytes // (s_in * itemsize)) // 128 * 128))
    while tn >= 128:
        if s_out % tn == 0:
            return tn
        tn -= 128
    return s_out


def _conv_toeplitz(weight_oihw, h2, w2, k_size, dtype):
    """(S_in, S_out) block-Toeplitz matrix of the 'same'-padded stride-1 conv, pre-scaled
    by the 0.25 mean-pool factor.  Rows: (h_in, w_in, cin); cols: (h_out, w_out, cout).
    Zero padding lives as structural zeros inside the matrix."""
    cout, cin = weight_oihw.shape[:2]
    pad = (k_size - 1) // 2
    w_hwio = jnp.transpose(weight_oihw, (2, 3, 1, 0))             # (k, k, Cin, Cout)
    dy = jnp.arange(h2)[:, None] - jnp.arange(h2)[None, :] + pad  # (h_in, h_out)
    dx = jnp.arange(w2)[:, None] - jnp.arange(w2)[None, :] + pad  # (w_in, w_out)
    vy = (dy >= 0) & (dy < k_size)
    vx = (dx >= 0) & (dx < k_size)
    t6 = w_hwio[jnp.clip(dy, 0, k_size - 1)[:, None, :, None],
                jnp.clip(dx, 0, k_size - 1)[None, :, None, :]]    # (h_i,w_i,h_o,w_o,Cin,Cout)
    valid = (vy[:, None, :, None] & vx[None, :, None, :])[..., None, None]
    t6 = jnp.where(valid, t6, jnp.zeros((), t6.dtype))
    t = jnp.transpose(t6, (0, 1, 4, 2, 3, 5)).reshape(h2 * w2 * cin, h2 * w2 * cout)
    return (0.25 * t).astype(dtype)                               # fold the mean-pool scale


def _mean_pool_conv_taps(x_taps, weight_oihw, bias, h2, w2, *,
                         k_size, out_dtype, batch_tile, compute_dtype):
    """x_taps: (4, N, S_in).  Returns (N, S_out) with columns (h2, w2, cout) flattened."""
    _, n, s_in = x_taps.shape
    cout = weight_oihw.shape[0]
    s_out = h2 * w2 * cout
    comp_size = jnp.dtype(compute_dtype).itemsize
    out_size = jnp.dtype(out_dtype).itemsize

    bt, n_pad = _choose_batch_tiling(n, batch_tile)
    tn = _choose_col_tile(s_in, s_out, comp_size)
    n_col_tiles = s_out // tn

    x_taps = x_taps.astype(compute_dtype)
    if n_pad != n:
        x_taps = jnp.pad(x_taps, ((0, 0), (0, n_pad - n), (0, 0)))

    t = _conv_toeplitz(weight_oihw, h2, w2, k_size, compute_dtype)
    b_tiled = jnp.tile(bias.astype(jnp.float32), h2 * w2).reshape(1, s_out)

    def vmem_limit(t_bufs):
        # Double-buffered x/out tiles, T/bias with t_bufs buffers, plus headroom.
        ws = (2 * 4 * bt * s_in * comp_size
              + t_bufs * s_in * tn * comp_size
              + 2 * bt * tn * out_size
              + t_bufs * tn * 4)
        # 16 MiB floor; 64 MiB cap keeps us inside v7x's physical VMEM (v5e/v6e have 128).
        return int(min(max(ws * 3 // 2 + (2 << 20), 16 << 20), 64 << 20))

    def run(single_buffer_consts):
        const_mode = {"pipeline_mode": pl.Buffered(1)} if single_buffer_consts else {}
        return pl.pallas_call(
            _meanpool_conv_kernel,
            out_shape=jax.ShapeDtypeStruct((n_pad, s_out), out_dtype),
            grid=(n_pad // bt, n_col_tiles),
            in_specs=[
                pl.BlockSpec((4, bt, s_in), lambda i, j: (0, i, 0)),
                pl.BlockSpec((s_in, tn), lambda i, j: (0, j), **const_mode),
                pl.BlockSpec((1, tn), lambda i, j: (0, j), **const_mode),
            ],
            out_specs=pl.BlockSpec((bt, tn), lambda i, j: (i, j)),
            compiler_params=pltpu.CompilerParams(
                dimension_semantics=("parallel", "parallel"),
                vmem_limit_bytes=vmem_limit(1 if single_buffer_consts else 2),
            ),
        )(x_taps, t, b_tiled)

    if n_col_tiles == 1:
        # T / bias are grid-invariant: request a single resident buffer (halves their
        # VMEM footprint, the key enabler on v7x's 64 MiB).  Fall back to the default
        # double buffer on JAX versions without pipeline_mode / Buffered(1) support.
        try:
            out = run(True)
        except Exception:  # pragma: no cover - compatibility fallback
            out = run(False)
    else:
        out = run(False)
    return out[:n]


def mean_pool_conv(x_nchw, weight_oihw, bias, *, k_size, batch_tile=128,
                   compute_dtype=jnp.bfloat16):
    """MeanPoolConv.forward in the module's native NCHW layout."""
    n, cin, h, w = x_nchw.shape
    assert h % 2 == 0 and w % 2 == 0, "mean-pool assumes even spatial dims"
    h2, w2 = h // 2, w // 2
    cout = weight_oihw.shape[0]
    # NCHW -> (4, N, H2*W2*Cin): one relayout pass over x (tap axis leading, lanes dense).
    x6 = x_nchw.reshape(n, cin, h2, 2, w2, 2)
    x_taps = jnp.transpose(x6, (3, 5, 0, 2, 4, 1)).reshape(4, n, h2 * w2 * cin)
    out = _mean_pool_conv_taps(x_taps, weight_oihw, bias, h2, w2, k_size=k_size,
                               out_dtype=x_nchw.dtype, batch_tile=batch_tile,
                               compute_dtype=compute_dtype)
    return jnp.transpose(out.reshape(n, h2, w2, cout), (0, 3, 1, 2))


def mean_pool_conv_nhwc(x_nhwc, weight_oihw, bias, *, k_size, batch_tile=128,
                        compute_dtype=jnp.bfloat16):
    """Same op for callers that keep activations in NHWC: avoids the NCHW<->NHWC
    relayouts entirely (the dominant HBM cost of the NCHW wrapper)."""
    n, h, w, cin = x_nhwc.shape
    assert h % 2 == 0 and w % 2 == 0, "mean-pool assumes even spatial dims"
    h2, w2 = h // 2, w // 2
    cout = weight_oihw.shape[0]
    x6 = x_nhwc.reshape(n, h2, 2, w2, 2, cin)
    x_taps = jnp.transpose(x6, (2, 4, 0, 1, 3, 5)).reshape(4, n, h2 * w2 * cin)
    out = _mean_pool_conv_taps(x_taps, weight_oihw, bias, h2, w2, k_size=k_size,
                               out_dtype=x_nhwc.dtype, batch_tile=batch_tile,
                               compute_dtype=compute_dtype)
    return out.reshape(n, h2, w2, cout)


def _reference(x, weight, bias, k_size):
    """Plain-JAX reference of MeanPoolConv.forward (NCHW)."""
    pooled = (x[:, :, ::2, ::2] + x[:, :, 1::2, ::2]
              + x[:, :, ::2, 1::2] + x[:, :, 1::2, 1::2]) / 4.0
    pad = (k_size - 1) // 2
    out = jax.lax.conv_general_dilated(
        pooled, weight, window_strides=(1, 1),
        padding=[(pad, pad), (pad, pad)],
        dimension_numbers=("NCHW", "OIHW", "NCHW"))
    return out + bias[None, :, None, None]


if __name__ == "__main__":
    # Small shapes consistent with the module: N=2, Cin=4, Cout=8, H=W=16, k=3.
    N, Cin, Cout, H, W, K = 2, 4, 8, 16, 16, 3

    key = jax.random.PRNGKey(0)
    kx, kw, kb = jax.random.split(key, 3)

    x = jax.random.normal(kx, (N, Cin, H, W), dtype=jnp.float32)
    bound = 1.0 / (Cin * K * K) ** 0.5
    weight = jax.random.uniform(kw, (Cout, Cin, K, K), jnp.float32, -bound, bound)
    bias = jax.random.uniform(kb, (Cout,), jnp.float32, -bound, bound)

    ref = _reference(x, weight, bias, K)

    # Default path: bf16 MXU, f32 accumulation.
    out = jax.block_until_ready(mean_pool_conv(x, weight, bias, k_size=K))
    assert out.shape == (N, Cout, H // 2, W // 2), out.shape
    assert jnp.allclose(out, ref, atol=5e-2, rtol=5e-2), float(jnp.abs(out - ref).max())

    # f32 path: tight structural parity with the reference conv.
    out_f32 = jax.block_until_ready(
        mean_pool_conv(x, weight, bias, k_size=K, compute_dtype=jnp.float32))
    assert jnp.allclose(out_f32, ref, atol=1e-4, rtol=1e-4), \
        float(jnp.abs(out_f32 - ref).max())

    print("KERNEL_OK")
</pallas_src>

<mosaic_0001>
module attributes {stable_mosaic.version = 11 : i64} {
  func.func @_meanpool_conv_kernel(%arg0: i32, %arg1: i32, %arg2: memref<4x8x256xbf16, #tpu.memory_space<vmem>>, %arg3: memref<256x512xbf16, #tpu.memory_space<vmem>>, %arg4: memref<1x512xf32, #tpu.memory_space<vmem>>, %arg5: memref<8x512xf32, #tpu.memory_space<vmem>>) attributes {dimension_semantics = [#tpu.dimension_semantics<parallel>, #tpu.dimension_semantics<parallel>], iteration_bounds = array<i64: 1, 1>, scalar_prefetch = 0 : i64, scratch_operands = 0 : i64, tpu.core_type = #tpu.core_type<tc>, window_params = [{transform_indices = @transform_0, window_bounds = array<i64: 4, 8, 256>}, {pipeline_mode = #tpu.pipeline_mode<synchronous>, transform_indices = @transform_1, window_bounds = array<i64: 256, 512>}, {pipeline_mode = #tpu.pipeline_mode<synchronous>, transform_indices = @transform_2, window_bounds = array<i64: 1, 512>}, {transform_indices = @transform_3, window_bounds = array<i64: 8, 512>}]} {
    %c0 = arith.constant 0 : index
    %c0_0 = arith.constant 0 : index
    %c0_1 = arith.constant 0 : index
    %0 = vector.load %arg2[%c0, %c0_0, %c0_1] : memref<4x8x256xbf16, #tpu.memory_space<vmem>>, vector<1x8x256xbf16>
    %1 = vector.shape_cast %0 : vector<1x8x256xbf16> to vector<8x256xbf16>
    %c1 = arith.constant 1 : index
    %c0_2 = arith.constant 0 : index
    %c0_3 = arith.constant 0 : index
    %2 = vector.load %arg2[%c1, %c0_2, %c0_3] : memref<4x8x256xbf16, #tpu.memory_space<vmem>>, vector<1x8x256xbf16>
    %3 = vector.shape_cast %2 : vector<1x8x256xbf16> to vector<8x256xbf16>
    %4 = arith.addf %1, %3 : vector<8x256xbf16>
    %c2 = arith.constant 2 : index
    %c0_4 = arith.constant 0 : index
    %c0_5 = arith.constant 0 : index
    %5 = vector.load %arg2[%c2, %c0_4, %c0_5] : memref<4x8x256xbf16, #tpu.memory_space<vmem>>, vector<1x8x256xbf16>
    %6 = vector.shape_cast %5 : vector<1x8x256xbf16> to vector<8x256xbf16>
    %7 = arith.addf %4, %6 : vector<8x256xbf16>
    %c3 = arith.constant 3 : index
    %c0_6 = arith.constant 0 : index
    %c0_7 = arith.constant 0 : index
    %8 = vector.load %arg2[%c3, %c0_6, %c0_7] : memref<4x8x256xbf16, #tpu.memory_space<vmem>>, vector<1x8x256xbf16>
    %9 = vector.shape_cast %8 : vector<1x8x256xbf16> to vector<8x256xbf16>
    %10 = arith.addf %7, %9 : vector<8x256xbf16>
    %c0_8 = arith.constant 0 : index
    %c0_9 = arith.constant 0 : index
    %11 = vector.load %arg3[%c0_8, %c0_9] : memref<256x512xbf16, #tpu.memory_space<vmem>>, vector<256x512xbf16>
    %cst = arith.constant dense<0.000000e+00> : vector<8x512xf32>
    %12 = tpu.matmul %10, %11, %cst {dimension_numbers = #tpu.dot_dimension_numbers<[1], [0], [0], [1], [0, 0, 1, 1], [], []>} : vector<8x256xbf16>, vector<256x512xbf16>, vector<8x512xf32> -> vector<8x512xf32>
    %c0_10 = arith.constant 0 : index
    %c0_11 = arith.constant 0 : index
    %13 = vector.load %arg4[%c0_10, %c0_11] : memref<1x512xf32, #tpu.memory_space<vmem>>, vector<1x512xf32>
    %14 = vector.broadcast %13 : vector<1x512xf32> to vector<8x512xf32>
    %15 = arith.addf %12, %14 : vector<8x512xf32>
    %c0_12 = arith.constant 0 : index
    %c0_13 = arith.constant 0 : index
    %16 = vector.load %arg5[%c0_12, %c0_13] : memref<8x512xf32, #tpu.memory_space<vmem>>, vector<8x512xf32>
    tpu.vector_store %arg5[%c0_12, %c0_13], %15 {strides = array<i32>} : memref<8x512xf32, #tpu.memory_space<vmem>>, vector<8x512xf32>,
    return
  }
  func.func @transform_0(%arg0: i32, %arg1: i32) -> (i32, i32, i32) {
    %c0_i32 = arith.constant 0 : i32
    %c0_i32_0 = arith.constant 0 : i32
    %c0_i32_1 = arith.constant 0 : i32
    return %c0_i32, %arg0, %c0_i32_0 : i32, i32, i32
  }
  func.func @transform_1(%arg0: i32, %arg1: i32) -> (i32, i32) {
    %c0_i32 = arith.constant 0 : i32
    %c0_i32_0 = arith.constant 0 : i32
    return %c0_i32, %arg1 : i32, i32
  }
  func.func @transform_2(%arg0: i32, %arg1: i32) -> (i32, i32) {
    %c0_i32 = arith.constant 0 : i32
    %c0_i32_0 = arith.constant 0 : i32
    return %c0_i32, %arg1 : i32, i32
  }
  func.func @transform_3(%arg0: i32, %arg1: i32) -> (i32, i32) {
    %c0_i32 = arith.constant 0 : i32
    return %arg0, %arg1 : i32, i32
  }
}

module attributes {stable_mosaic.version = 11 : i64} {
  func.func @_meanpool_conv_kernel(%arg0: i32, %arg1: i32, %arg2: memref<4x8x256xbf16, #tpu.memory_space<vmem>>, %arg3: memref<256x512xbf16, #tpu.memory_space<vmem>>, %arg4: memref<1x512xf32, #tpu.memory_space<vmem>>, %arg5: memref<8x512xf32, #tpu.memory_space<vmem>>) attributes {dimension_semantics = [#tpu.dimension_semantics<parallel>, #tpu.dimension_semantics<parallel>], iteration_bounds = array<i64: 1, 1>, scalar_prefetch = 0 : i64, scratch_operands = 0 : i64, tpu.core_type = #tpu.core_type<tc>, window_params = [{transform_indices = @transform_0, window_bounds = array<i64: 4, 8, 256>}, {transform_indices = @transform_1, window_bounds = array<i64: 256, 512>}, {transform_indices = @transform_2, window_bounds = array<i64: 1, 512>}, {transform_indices = @transform_3, window_bounds = array<i64: 8, 512>}]} {
    %c0 = arith.constant 0 : index
    %c0_0 = arith.constant 0 : index
    %c0_1 = arith.constant 0 : index
    %0 = vector.load %arg2[%c0, %c0_0, %c0_1] : memref<4x8x256xbf16, #tpu.memory_space<vmem>>, vector<1x8x256xbf16>
    %1 = vector.shape_cast %0 : vector<1x8x256xbf16> to vector<8x256xbf16>
    %c1 = arith.constant 1 : index
    %c0_2 = arith.constant 0 : index
    %c0_3 = arith.constant 0 : index
    %2 = vector.load %arg2[%c1, %c0_2, %c0_3] : memref<4x8x256xbf16, #tpu.memory_space<vmem>>, vector<1x8x256xbf16>
    %3 = vector.shape_cast %2 : vector<1x8x256xbf16> to vector<8x256xbf16>
    %4 = arith.addf %1, %3 : vector<8x256xbf16>
    %c2 = arith.constant 2 : index
    %c0_4 = arith.constant 0 : index
    %c0_5 = arith.constant 0 : index
    %5 = vector.load %arg2[%c2, %c0_4, %c0_5] : memref<4x8x256xbf16, #tpu.memory_space<vmem>>, vector<1x8x256xbf16>
    %6 = vector.shape_cast %5 : vector<1x8x256xbf16> to vector<8x256xbf16>
    %7 = arith.addf %4, %6 : vector<8x256xbf16>
    %c3 = arith.constant 3 : index
    %c0_6 = arith.constant 0 : index
    %c0_7 = arith.constant 0 : index
    %8 = vector.load %arg2[%c3, %c0_6, %c0_7] : memref<4x8x256xbf16, #tpu.memory_space<vmem>>, vector<1x8x256xbf16>
    %9 = vector.shape_cast %8 : vector<1x8x256xbf16> to vector<8x256xbf16>
    %10 = arith.addf %7, %9 : vector<8x256xbf16>
    %c0_8 = arith.constant 0 : index
    %c0_9 = arith.constant 0 : index
    %11 = vector.load %arg3[%c0_8, %c0_9] : memref<256x512xbf16, #tpu.memory_space<vmem>>, vector<256x512xbf16>
    %cst = arith.constant dense<0.000000e+00> : vector<8x512xf32>
    %12 = tpu.matmul %10, %11, %cst {dimension_numbers = #tpu.dot_dimension_numbers<[1], [0], [0], [1], [0, 0, 1, 1], [], []>} : vector<8x256xbf16>, vector<256x512xbf16>, vector<8x512xf32> -> vector<8x512xf32>
    %c0_10 = arith.constant 0 : index
    %c0_11 = arith.constant 0 : index
    %13 = vector.load %arg4[%c0_10, %c0_11] : memref<1x512xf32, #tpu.memory_space<vmem>>, vector<1x512xf32>
    %14 = vector.broadcast %13 : vector<1x512xf32> to vector<8x512xf32>
    %15 = arith.addf %12, %14 : vector<8x512xf32>
    %c0_12 = arith.constant 0 : index
    %c0_13 = arith.constant 0 : index
    %16 = vector.load %arg5[%c0_12, %c0_13] : memref<8x512xf32, #tpu.memory_space<vmem>>, vector<8x512xf32>
    tpu.vector_store %arg5[%c0_12, %c0_13], %15 {strides = array<i32>} : memref<8x512xf32, #tpu.memory_space<vmem>>, vector<8x512xf32>,
    return
  }
  func.func @transform_0(%arg0: i32, %arg1: i32) -> (i32, i32, i32) {
    %c0_i32 = arith.constant 0 : i32
    %c0_i32_0 = arith.constant 0 : i32
    %c0_i32_1 = arith.constant 0 : i32
    return %c0_i32, %arg0, %c0_i32_0 : i32, i32, i32
  }
  func.func @transform_1(%arg0: i32, %arg1: i32) -> (i32, i32) {
    %c0_i32 = arith.constant 0 : i32
    %c0_i32_0 = arith.constant 0 : i32
    return %c0_i32, %arg1 : i32, i32
  }
  func.func @transform_2(%arg0: i32, %arg1: i32) -> (i32, i32) {
    %c0_i32 = arith.constant 0 : i32
    %c0_i32_0 = arith.constant 0 : i32
    return %c0_i32, %arg1 : i32, i32
  }
  func.func @transform_3(%arg0: i32, %arg1: i32) -> (i32, i32) {
    %c0_i32 = arith.constant 0 : i32
    return %arg0, %arg1 : i32, i32
  }
}

</mosaic_0001>

<bundles_post_ra>
// kernel: tpu_custom_call.1
= control target key start
LH: loop header
LB: loop body
LE: loop exit
PB: predicated region body
PF: predicated region fallthrough
CT: control target
= control target key end

     0   :  { %8 = vsyncpa [#allocation3], 0  ;;  %s875_s0 = inlined_call_operand.hbm [shape: bf16[4,8,256], index: 0, kind: input, shape index: {}]   ;;  %s876_s1 = inlined_call_operand.hbm [shape: bf16[256,512], index: 1, kind: input, shape index: {}]   ;;  %s877_s2 = inlined_call_operand.hbm [shape: f32[1,512], index: 2, kind: input, shape index: {}]   ;;  %s878_s3 = inlined_call_operand.hbm [shape: f32[8,512], index: 3, kind: output, shape index: {}]  }
   0x1   :  { %9 = vsyncpa [#allocation6], 0 }
   0x2   :  { %10 = vsyncpa [#allocation4], 0  ;;  %s835_s12 = smov [#allocation5]  }
   0x3   :  { %s28_s13 = sshll.u32 %s835_s12, 4  ;;  %s29_s13 = int_to_ptr.vmem [resolvable:$true] %s28_s13 }
   0x4   :  { %s757_s14 = scalar_lea.vmem %s29_s13, 8192  ;;  %p762_p1 = scmp.lt.s32.totalorder %s29_s13, %s29_s13 }
   0x5   :  { %p758_p0 = scmp.ne.s32.totalorder %s29_s13, %s757_s14  ;;  %p763_p2 = scmp.lt.s32.totalorder %s757_s14, %s757_s14 }
   0x7   :  { %p764_p3 = por %p763_p2, %p762_p1 }
   0x9   :  { %p765_p4 = pnand %p764_p3, %p758_p0 }
   0xb   :  { %768 = shalt.err (!%p765_p4)
}
   0xc   :  { %s836_s15 = smov 256   ;;  %s837_s16 = smov 16  }
   0xd   :  { %34 = dma.hbm_to_vmem [thread:$0]  %s876_s1, 8192, %s29_s13, [#allocation6], %s836_s15, %s836_s15, %s837_s16  }
   0xe   :  { %s838_s19 = smov [#allocation2]  }
   0xf   :  { %s16_s20 = sshll.u32 %s838_s19, 4  ;;  %s17_s20 = int_to_ptr.vmem [resolvable:$true] %s16_s20 }
  0x10   :  { %s777_s21 = scalar_lea.vmem %s17_s20, 512  ;;  %p782_p6 = scmp.lt.s32.totalorder %s17_s20, %s17_s20 }
  0x11   :  { %p778_p5 = scmp.ne.s32.totalorder %s17_s20, %s777_s21  ;;  %p783_p7 = scmp.lt.s32.totalorder %s777_s21, %s777_s21 }
  0x13   :  { %p784_p8 = por %p783_p7, %p782_p6 }
  0x15   :  { %p785_p9 = pnand %p784_p8, %p778_p5 }
  0x17   :  { %788 = shalt.err (!%p785_p9)
}
  0x18   :  { %s839_s22 = smov 128   ;;  %s840_s23 = smov 8  }
  0x19   :  { %22 = dma.hbm_to_vmem [thread:$0]  %s875_s0, 512, %s17_s20, [#allocation3], %s839_s22, %s839_s22, %s840_s23  }
  0x1a   :  { %s841_s26 = smov [#allocation7]  }
  0x1b   :  { %s41_s27 = sshll.u32 %s841_s26, 4  ;;  %s42_s27 = int_to_ptr.vmem [resolvable:$true] %s41_s27 }
  0x1c   :  { %s797_s1 = scalar_lea.vmem %s42_s27, 64  ;;  %p802_p11 = scmp.lt.s32.totalorder %s42_s27, %s42_s27 }
  0x1d   :  { %p798_p10 = scmp.ne.s32.totalorder %s42_s27, %s797_s1  ;;  %p803_p12 = scmp.lt.s32.totalorder %s797_s1, %s797_s1 }
  0x1f   :  { %p804_p13 = por %p803_p12, %p802_p11 }
  0x21   :  { %p805_p0 = pnand %p804_p13, %p798_p10 }
  0x23   :  { %808 = shalt.err (!%p805_p0)
}
  0x24   :  { %44 = dma.hbm_to_vmem [thread:$0]  %s877_s2, 64, %s42_s27, [#allocation6]  }
  0x25   :  { %829 = dma.done.wait [#allocation3], 512  }
  0x26   :  { %830 = vsyncadd [#allocation3], 4294966784 }
  0x27   :  { %831 = dma.done.wait [#allocation6], 8256  }
  0x28   :  { %832 = vsyncadd [#allocation6], 4294959040  ;;  %v653_v0 = vld [vmem:[#allocation5 + $0xe4] ss:$16 sps:$4 sm:$0xff]   ;;  %v655_v1 = vld [vmem:[#allocation5 + $0xec] ss:$16 sps:$4 sm:$0xff]  }
  0x29   :  { %477 = vmatprep.subr.bf16.mxu0 %v653_v0  ;;  %v657_v2 = vld [vmem:[#allocation5 + $0xe0] ss:$16 sps:$4 sm:$0xff]   ;;  %v658_v3 = vld [vmem:[#allocation5 + $0xe8] ss:$16 sps:$4 sm:$0xff]   ;;  %518 = vmatprep.subr.bf16.mxu1 %v655_v1  ;;  %v659_v4 = vld [vmem:[#allocation5 + $0xc4] ss:$16 sps:$4 sm:$0xff]  }
  0x2a   :  { %478 = vmatpush1.bf16.msra.mxu0 %v657_v2  ;;  %519 = vmatpush1.bf16.msra.mxu1 %v658_v3  ;;  %v661_v5 = vld [vmem:[#allocation5 + $0xcc] ss:$16 sps:$4 sm:$0xff]   ;;  %v663_v6 = vld [vmem:[#allocation5 + $0xc0] ss:$16 sps:$4 sm:$0xff]   ;;  %v664_v7 = vld [vmem:[#allocation5 + $0xc8] ss:$16 sps:$4 sm:$0xff]  }
  0x2b   :  { %479 = vmatprep.subr.bf16.mxu0 %v659_v4  ;;  %520 = vmatprep.subr.bf16.mxu1 %v661_v5  ;;  %v665_v8 = vld [vmem:[#allocation5 + $0xa4] ss:$16 sps:$4 sm:$0xff]   ;;  %v667_v9 = vld [vmem:[#allocation5 + $0xac] ss:$16 sps:$4 sm:$0xff]   ;;  %v669_v10 = vld [vmem:[#allocation5 + $0xa0] ss:$16 sps:$4 sm:$0xff]  }
  0x2c   :  { %v670_v11 = vld [vmem:[#allocation5 + $0xa8] ss:$16 sps:$4 sm:$0xff]   ;;  %v671_v12 = vld [vmem:[#allocation5 + $0x84] ss:$16 sps:$4 sm:$0xff]   ;;  %v673_v13 = vld [vmem:[#allocation5 + $0x8c] ss:$16 sps:$4 sm:$0xff]  }
  0x2d   :  { %v675_v14 = vld [vmem:[#allocation5 + $0x80] ss:$16 sps:$4 sm:$0xff]   ;;  %v676_v15 = vld [vmem:[#allocation5 + $0x88] ss:$16 sps:$4 sm:$0xff]   ;;  %v677_v16 = vld [vmem:[#allocation5 + $0x64] ss:$16 sps:$4 sm:$0xff]  }
  0x2e   :  { %480 = vmatpush1.bf16.msra.mxu0 %v663_v6  ;;  %521 = vmatpush1.bf16.msra.mxu1 %v664_v7  ;;  %v679_v17 = vld [vmem:[#allocation5 + $0x6c] ss:$16 sps:$4 sm:$0xff]   ;;  %v681_v18 = vld [vmem:[#allocation5 + $0x60] ss:$16 sps:$4 sm:$0xff]   ;;  %v682_v19 = vld [vmem:[#allocation5 + $0x68] ss:$16 sps:$4 sm:$0xff]  }
  0x2f   :  { %481 = vmatprep.subr.bf16.mxu0 %v665_v8  ;;  %522 = vmatprep.subr.bf16.mxu1 %v667_v9  ;;  %v683_v20 = vld [vmem:[#allocation5 + $0x44] ss:$16 sps:$4 sm:$0xff]   ;;  %v685_v21 = vld [vmem:[#allocation5 + $0x4c] ss:$16 sps:$4 sm:$0xff]   ;;  %v687_v22 = vld [vmem:[#allocation5 + $0x40] ss:$16 sps:$4 sm:$0xff]   ;;  %v130_v9 = vlaneseq }
  0x30   :  { %v688_v23 = vld [vmem:[#allocation5 + $0x48] ss:$16 sps:$4 sm:$0xff]   ;;  %v689_v24 = vld [vmem:[#allocation5 + $0x24] ss:$16 sps:$4 sm:$0xff]   ;;  %v691_v25 = vld [vmem:[#allocation5 + $0x2c] ss:$16 sps:$4 sm:$0xff]  }
  0x31   :  { %v693_v26 = vld [vmem:[#allocation5 + $0x20] ss:$16 sps:$4 sm:$0xff]   ;;  %v694_v27 = vld [vmem:[#allocation5 + $0x28] ss:$16 sps:$4 sm:$0xff]   ;;  %v695_v28 = vld [vmem:[#allocation5 + $0x4] ss:$16 sps:$4 sm:$0xff]  }
  0x32   :  { %482 = vmatpush1.bf16.msra.mxu0 %v669_v10  ;;  %523 = vmatpush1.bf16.msra.mxu1 %v670_v11  ;;  %v697_v29 = vld [vmem:[#allocation5 + $0xc] ss:$16 sps:$4 sm:$0xff]   ;;  %v699_v30 = vld [vmem:[#allocation5] ss:$16 sps:$4 sm:$0xff]   ;;  %v700_v31 = vld [vmem:[#allocation5 + $0x8] ss:$16 sps:$4 sm:$0xff]  }
  0x33   :  { %483 = vmatprep.subr.bf16.mxu0 %v671_v12  ;;  %524 = vmatprep.subr.bf16.mxu1 %v673_v13  ;;  %v701_v32 = vld [vmem:[#allocation5 + $0x1e4] ss:$16 sps:$4 sm:$0xff]   ;;  %v703_v33 = vld [vmem:[#allocation5 + $0x1ec] ss:$16 sps:$4 sm:$0xff]   ;;  %v705_v34 = vld [vmem:[#allocation5 + $0x1e0] ss:$16 sps:$4 sm:$0xff]  }
  0x34   :  { %v706_v35 = vld [vmem:[#allocation5 + $0x1e8] ss:$16 sps:$4 sm:$0xff]   ;;  %v707_v36 = vld [vmem:[#allocation5 + $0x1c4] ss:$16 sps:$4 sm:$0xff]   ;;  %v709_v37 = vld [vmem:[#allocation5 + $0x1cc] ss:$16 sps:$4 sm:$0xff]  }
  0x35   :  { %v711_v38 = vld [vmem:[#allocation5 + $0x1c0] ss:$16 sps:$4 sm:$0xff]   ;;  %v712_v39 = vld [vmem:[#allocation5 + $0x1c8] ss:$16 sps:$4 sm:$0xff]   ;;  %v713_v40 = vld [vmem:[#allocation5 + $0x1a4] ss:$16 sps:$4 sm:$0xff]  }
  0x36   :  { %484 = vmatpush1.bf16.msra.mxu0 %v675_v14  ;;  %525 = vmatpush1.bf16.msra.mxu1 %v676_v15  ;;  %v715_v41 = vld [vmem:[#allocation5 + $0x1ac] ss:$16 sps:$4 sm:$0xff]   ;;  %v717_v42 = vld [vmem:[#allocation5 + $0x1a0] ss:$16 sps:$4 sm:$0xff]   ;;  %v718_v43 = vld [vmem:[#allocation5 + $0x1a8] ss:$16 sps:$4 sm:$0xff]  }
  0x37   :  { %485 = vmatprep.subr.bf16.mxu0 %v677_v16  ;;  %526 = vmatprep.subr.bf16.mxu1 %v679_v17  ;;  %v719_v44 = vld [vmem:[#allocation5 + $0x184] ss:$16 sps:$4 sm:$0xff]   ;;  %v721_v45 = vld [vmem:[#allocation5 + $0x18c] ss:$16 sps:$4 sm:$0xff]   ;;  %v723_v49 = vld [vmem:[#allocation5 + $0x180] ss:$16 sps:$4 sm:$0xff]  }
  0x38   :  { %v54_v46 = vld [vmem:[#allocation2] sm:$0xff]  ;;  %v56_v47 = vld [vmem:[#allocation2 + $0x8] sm:$0xff]  ;;  %v59_v48 = vld [vmem:[#allocation2 + $0x10] sm:$0xff]  ;;  %v131_v10 = vshrl.u32 %v130_v9, 7  ;;  %s842_s0 = smov [#allocation8]  }
  0x39   :  { %v724_v50 = vld [vmem:[#allocation5 + $0x188] ss:$16 sps:$4 sm:$0xff]   ;;  %v57_v51 = vadd.bf16 %v56_v47, %v54_v46  ;;  %v725_v52 = vld [vmem:[#allocation5 + $0x164] ss:$16 sps:$4 sm:$0xff]   ;;  %v727_v53 = vld [vmem:[#allocation5 + $0x16c] ss:$16 sps:$4 sm:$0xff]  }
  0x3a   :  { %486 = vmatpush1.bf16.msra.mxu0 %v681_v18  ;;  %527 = vmatpush1.bf16.msra.mxu1 %v682_v19  ;;  %v62_v54 = vld [vmem:[#allocation2 + $0x18] sm:$0xff]  ;;  %v729_v56 = vld [vmem:[#allocation5 + $0x160] ss:$16 sps:$4 sm:$0xff]   ;;  %v731_v59 = vld [vmem:[#allocation5 + $0x144] ss:$16 sps:$4 sm:$0xff]   ;;  %v132_v11 = vsub.s32 0, %v131_v10 }
  0x3b   :  { %487 = vmatprep.subr.bf16.mxu0 %v683_v20  ;;  %528 = vmatprep.subr.bf16.mxu1 %v685_v21  ;;  %v60_v55 = vadd.bf16 %v59_v48, %v57_v51  ;;  %v730_v57 = vld [vmem:[#allocation5 + $0x168] ss:$16 sps:$4 sm:$0xff]   ;;  %v733_v60 = vld [vmem:[#allocation5 + $0x14c] ss:$16 sps:$4 sm:$0xff]   ;;  %v735_v62 = vld [vmem:[#allocation5 + $0x140] ss:$16 sps:$4 sm:$0xff]  }
  0x3c   :  { %v736_v63 = vld [vmem:[#allocation5 + $0x148] ss:$16 sps:$4 sm:$0xff]   ;;  %v737_v0 = vld [vmem:[#allocation5 + $0x124] ss:$16 sps:$4 sm:$0xff]   ;;  %v739_v1 = vld [vmem:[#allocation5 + $0x12c] ss:$16 sps:$4 sm:$0xff]  }
  0x3d   :  { %v63_v58 = vadd.bf16 %v62_v54, %v60_v55  ;;  %v741_v2 = vld [vmem:[#allocation5 + $0x120] ss:$16 sps:$4 sm:$0xff]   ;;  %v742_v3 = vld [vmem:[#allocation5 + $0x128] ss:$16 sps:$4 sm:$0xff]   ;;  %v743_v4 = vld [vmem:[#allocation5 + $0x104] ss:$16 sps:$4 sm:$0xff]  }
  0x3e   :  { %488 = vmatpush1.bf16.msra.mxu0 %v687_v22  ;;  %529 = vmatpush1.bf16.msra.mxu1 %v688_v23  ;;  %v745_v5 = vld [vmem:[#allocation5 + $0x10c] ss:$16 sps:$4 sm:$0xff]   ;;  %v747_v6 = vld [vmem:[#allocation5 + $0x100] ss:$16 sps:$4 sm:$0xff]   ;;  %v748_v7 = vld [vmem:[#allocation5 + $0x108] ss:$16 sps:$4 sm:$0xff]  }
  0x3f   :  { %489 = vmatprep.subr.bf16.mxu0 %v689_v24  ;;  %530 = vmatprep.subr.bf16.mxu1 %v691_v25  ;;  %v580_v61 = vcombine.high %v63_v58, %v63_v58  ;;  %v579_v8 = vcombine.low %v63_v58, %v63_v58  ;;  %v140_v12 = vsub.s32 2, %v131_v10  ;;  %v128_v13 = vld [vmem:[#allocation7] sm:$0xf]  ;;  %v136_v14 = vsub.s32 1, %v131_v10  ;;  %s569_s2 = sshll.u32 %s842_s0, 4  ;;  %s570_s2 = int_to_ptr.vmem [resolvable:$true] %s569_s2 }
  0x40   :  { %v144_v15 = vsub.s32 3, %v131_v10  ;;  %v133_v16 = vrot.slane %v128_v13, %v132_v11  ;;  %s809_s30 = scalar_lea.vmem %s570_s2, 512  ;;  %p814_p2 = scmp.lt.s32.totalorder %s570_s2, %s570_s2 }
  0x41   :  { %509 = vmatprep.mubr.bf16.mxu0 %v580_v61  ;;  %550 = vmatprep.mubr.bf16.mxu1 %v580_v61  ;;  %v141_v17 = vrot.slane %v128_v13, %v140_v12  ;;  %v137_v18 = vrot.slane %v128_v13, %v136_v14  ;;  %p810_p1 = scmp.ne.s32.totalorder %s570_s2, %s809_s30  ;;  %p815_p3 = scmp.lt.s32.totalorder %s809_s30, %s809_s30 }
  0x42   :  { %490 = vmatpush1.bf16.msra.mxu0 %v693_v26  ;;  %531 = vmatpush1.bf16.msra.mxu1 %v694_v27  ;;  %v145_v19 = vrot.slane %v128_v13, %v144_v15 }
  0x43   :  { %491 = vmatprep.subr.bf16.mxu0 %v695_v28  ;;  %532 = vmatprep.subr.bf16.mxu1 %v697_v29  ;;  %p816_p4 = por %p815_p3, %p814_p2 }
  0x45   :  { %p817_p5 = pnand %p816_p4, %p810_p1 }
  0x46   :  { %492 = vmatpush1.bf16.msra.mxu0 %v699_v30  ;;  %533 = vmatpush1.bf16.msra.mxu1 %v700_v31 }
  0x47   :  { %493 = vmatprep.subr.bf16.mxu0 %v701_v32  ;;  %534 = vmatprep.subr.bf16.mxu1 %v703_v33 }
  0x4a   :  { %494 = vmatpush2.bf16.msra.mxu0 %v705_v34  ;;  %535 = vmatpush2.bf16.msra.mxu1 %v706_v35 }
  0x4b   :  { %495 = vmatprep.subr.bf16.mxu0 %v707_v36  ;;  %536 = vmatprep.subr.bf16.mxu1 %v709_v37 }
  0x4e   :  { %496 = vmatpush2.bf16.msra.mxu0 %v711_v38  ;;  %537 = vmatpush2.bf16.msra.mxu1 %v712_v39 }
  0x4f   :  { %497 = vmatprep.subr.bf16.mxu0 %v713_v40  ;;  %538 = vmatprep.subr.bf16.mxu1 %v715_v41 }
  0x52   :  { %498 = vmatpush2.bf16.msra.mxu0 %v717_v42  ;;  %539 = vmatpush2.bf16.msra.mxu1 %v718_v43 }
  0x53   :  { %499 = vmatprep.subr.bf16.mxu0 %v719_v44  ;;  %540 = vmatprep.subr.bf16.mxu1 %v721_v45 }
  0x56   :  { %500 = vmatpush2.bf16.msra.mxu0 %v723_v49  ;;  %541 = vmatpush2.bf16.msra.mxu1 %v724_v50 }
  0x57   :  { %501 = vmatprep.subr.bf16.mxu0 %v725_v52  ;;  %542 = vmatprep.subr.bf16.mxu1 %v727_v53 }
  0x5a   :  { %502 = vmatpush2.bf16.msra.mxu0 %v729_v56  ;;  %543 = vmatpush2.bf16.msra.mxu1 %v730_v57 }
  0x5b   :  { %503 = vmatprep.subr.bf16.mxu0 %v731_v59  ;;  %544 = vmatprep.subr.bf16.mxu1 %v733_v60 }
  0x5e   :  { %504 = vmatpush2.bf16.msra.mxu0 %v735_v62  ;;  %545 = vmatpush2.bf16.msra.mxu1 %v736_v63 }
  0x5f   :  { %505 = vmatprep.subr.bf16.mxu0 %v737_v0  ;;  %546 = vmatprep.subr.bf16.mxu1 %v739_v1 }
  0x62   :  { %506 = vmatpush2.bf16.msra.mxu0 %v741_v2  ;;  %547 = vmatpush2.bf16.msra.mxu1 %v742_v3 }
  0x63   :  { %507 = vmatprep.subr.bf16.mxu0 %v743_v4  ;;  %548 = vmatprep.subr.bf16.mxu1 %v745_v5 }
  0x66   :  { %508 = vmatpush2.bf16.msra.mxu0 %v747_v6  ;;  %549 = vmatpush2.bf16.msra.mxu1 %v748_v7 }
  0x69   :  { %510 = vmatmul.mubr.bf16.vlgmr.msra.gmra.mxu0 %v579_v8  ;;  %551 = vmatmul.mubr.bf16.vlgmr.msra.gmra.mxu1 %v579_v8 }
 0x129   :  { %v511_v20 = vpop.f32.mrf.mxu0  ;;  %v552_v21 = vpop.f32.mrf.mxu1 }
 0x12a   :  { %v512_v22 = vadd.f32 %v511_v20, %v133_v16  ;;  %v553_v23 = vadd.f32 %v552_v21, %v141_v17 }
 0x12b   :  { %v513_v24 = vpop.f32.mrf.mxu0  ;;  %v554_v25 = vpop.f32.mrf.mxu1 }
 0x12c   :  { %559 = vst [vmem:[#allocation8] sm:$0xff] %v512_v22  ;;  %561 = vst [vmem:[#allocation8 + $0x10] sm:$0xff] %v553_v23  ;;  %v514_v26 = vadd.f32 %v513_v24, %v137_v18  ;;  %v555_v27 = vadd.f32 %v554_v25, %v145_v19 }
 0x12d   :  { %v515_v28 = vpop.f32.mrf.mxu0  ;;  %v556_v29 = vpop.f32.mrf.mxu1 }
 0x12e   :  { %560 = vst [vmem:[#allocation8 + $0x8] sm:$0xff] %v514_v26  ;;  %562 = vst [vmem:[#allocation8 + $0x18] sm:$0xff] %v555_v27 }
 0x12f   :  { %v516_v30 = vpop.f32.mrf.mxu0  ;;  %v557_v31 = vpop.f32.mrf.mxu1 }
 0x130   :  { %820 = shalt.err (!%p817_p5)
}
 0x131   :  { %572 = dma.vmem_to_hbm [thread:$0]  %s570_s2, 512, %s878_s3, [#allocation4]  }
 0x132   :  { %833 = dma.done.wait [#allocation4], 512  }
 0x133   :  { %834 = vsyncadd [#allocation4], 4294966784 }
 0x134   :  { %576 = vsyncpa [#allocation3], 1 }
 0x135   :  { %577 = vsyncpa [#allocation6], 1 }
 0x136   :  { %578 = vsyncpa [#allocation4], 1 }

// kernel: tpu_custom_call.1
= control target key start
LH: loop header
LB: loop body
LE: loop exit
PB: predicated region body
PF: predicated region fallthrough
CT: control target
= control target key end

     0   :  { %8 = vsyncpa [#allocation3], 0  ;;  %s875_s0 = inlined_call_operand.hbm [shape: bf16[4,8,256], index: 0, kind: input, shape index: {}]   ;;  %s876_s1 = inlined_call_operand.hbm [shape: bf16[256,512], index: 1, kind: input, shape index: {}]   ;;  %s877_s2 = inlined_call_operand.hbm [shape: f32[1,512], index: 2, kind: input, shape index: {}]   ;;  %s878_s3 = inlined_call_operand.hbm [shape: f32[8,512], index: 3, kind: output, shape index: {}]  }
   0x1   :  { %9 = vsyncpa [#allocation6], 0 }
   0x2   :  { %10 = vsyncpa [#allocation4], 0  ;;  %s835_s12 = smov [#allocation5]  }
   0x3   :  { %s28_s13 = sshll.u32 %s835_s12, 4  ;;  %s29_s13 = int_to_ptr.vmem [resolvable:$true] %s28_s13 }
   0x4   :  { %s757_s14 = scalar_lea.vmem %s29_s13, 8192  ;;  %p762_p1 = scmp.lt.s32.totalorder %s29_s13, %s29_s13 }
   0x5   :  { %p758_p0 = scmp.ne.s32.totalorder %s29_s13, %s757_s14  ;;  %p763_p2 = scmp.lt.s32.totalorder %s757_s14, %s757_s14 }
   0x7   :  { %p764_p3 = por %p763_p2, %p762_p1 }
   0x9   :  { %p765_p4 = pnand %p764_p3, %p758_p0 }
   0xb   :  { %768 = shalt.err (!%p765_p4)
}
   0xc   :  { %s836_s15 = smov 256   ;;  %s837_s16 = smov 16  }
   0xd   :  { %34 = dma.hbm_to_vmem [thread:$0]  %s876_s1, 8192, %s29_s13, [#allocation6], %s836_s15, %s836_s15, %s837_s16  }
   0xe   :  { %s838_s19 = smov [#allocation2]  }
   0xf   :  { %s16_s20 = sshll.u32 %s838_s19, 4  ;;  %s17_s20 = int_to_ptr.vmem [resolvable:$true] %s16_s20 }
  0x10   :  { %s777_s21 = scalar_lea.vmem %s17_s20, 512  ;;  %p782_p6 = scmp.lt.s32.totalorder %s17_s20, %s17_s20 }
  0x11   :  { %p778_p5 = scmp.ne.s32.totalorder %s17_s20, %s777_s21  ;;  %p783_p7 = scmp.lt.s32.totalorder %s777_s21, %s777_s21 }
  0x13   :  { %p784_p8 = por %p783_p7, %p782_p6 }
  0x15   :  { %p785_p9 = pnand %p784_p8, %p778_p5 }
  0x17   :  { %788 = shalt.err (!%p785_p9)
}
  0x18   :  { %s839_s22 = smov 128   ;;  %s840_s23 = smov 8  }
  0x19   :  { %22 = dma.hbm_to_vmem [thread:$0]  %s875_s0, 512, %s17_s20, [#allocation3], %s839_s22, %s839_s22, %s840_s23  }
  0x1a   :  { %s841_s26 = smov [#allocation7]  }
  0x1b   :  { %s41_s27 = sshll.u32 %s841_s26, 4  ;;  %s42_s27 = int_to_ptr.vmem [resolvable:$true] %s41_s27 }
  0x1c   :  { %s797_s1 = scalar_lea.vmem %s42_s27, 64  ;;  %p802_p11 = scmp.lt.s32.totalorder %s42_s27, %s42_s27 }
  0x1d   :  { %p798_p10 = scmp.ne.s32.totalorder %s42_s27, %s797_s1  ;;  %p803_p12 = scmp.lt.s32.totalorder %s797_s1, %s797_s1 }
  0x1f   :  { %p804_p13 = por %p803_p12, %p802_p11 }
  0x21   :  { %p805_p0 = pnand %p804_p13, %p798_p10 }
  0x23   :  { %808 = shalt.err (!%p805_p0)
}
  0x24   :  { %44 = dma.hbm_to_vmem [thread:$0]  %s877_s2, 64, %s42_s27, [#allocation6]  }
  0x25   :  { %829 = dma.done.wait [#allocation3], 512  }
  0x26   :  { %830 = vsyncadd [#allocation3], 4294966784 }
  0x27   :  { %831 = dma.done.wait [#allocation6], 8256  }
  0x28   :  { %832 = vsyncadd [#allocation6], 4294959040  ;;  %v653_v0 = vld [vmem:[#allocation5 + $0xe4] ss:$16 sps:$4 sm:$0xff]   ;;  %v655_v1 = vld [vmem:[#allocation5 + $0xec] ss:$16 sps:$4 sm:$0xff]  }
  0x29   :  { %477 = vmatprep.subr.bf16.mxu0 %v653_v0  ;;  %v657_v2 = vld [vmem:[#allocation5 + $0xe0] ss:$16 sps:$4 sm:$0xff]   ;;  %v658_v3 = vld [vmem:[#allocation5 + $0xe8] ss:$16 sps:$4 sm:$0xff]   ;;  %518 = vmatprep.subr.bf16.mxu1 %v655_v1  ;;  %v659_v4 = vld [vmem:[#allocation5 + $0xc4] ss:$16 sps:$4 sm:$0xff]  }
  0x2a   :  { %478 = vmatpush1.bf16.msra.mxu0 %v657_v2  ;;  %519 = vmatpush1.bf16.msra.mxu1 %v658_v3  ;;  %v661_v5 = vld [vmem:[#allocation5 + $0xcc] ss:$16 sps:$4 sm:$0xff]   ;;  %v663_v6 = vld [vmem:[#allocation5 + $0xc0] ss:$16 sps:$4 sm:$0xff]   ;;  %v664_v7 = vld [vmem:[#allocation5 + $0xc8] ss:$16 sps:$4 sm:$0xff]  }
  0x2b   :  { %479 = vmatprep.subr.bf16.mxu0 %v659_v4  ;;  %520 = vmatprep.subr.bf16.mxu1 %v661_v5  ;;  %v665_v8 = vld [vmem:[#allocation5 + $0xa4] ss:$16 sps:$4 sm:$0xff]   ;;  %v667_v9 = vld [vmem:[#allocation5 + $0xac] ss:$16 sps:$4 sm:$0xff]   ;;  %v669_v10 = vld [vmem:[#allocation5 + $0xa0] ss:$16 sps:$4 sm:$0xff]  }
  0x2c   :  { %v670_v11 = vld [vmem:[#allocation5 + $0xa8] ss:$16 sps:$4 sm:$0xff]   ;;  %v671_v12 = vld [vmem:[#allocation5 + $0x84] ss:$16 sps:$4 sm:$0xff]   ;;  %v673_v13 = vld [vmem:[#allocation5 + $0x8c] ss:$16 sps:$4 sm:$0xff]  }
  0x2d   :  { %v675_v14 = vld [vmem:[#allocation5 + $0x80] ss:$16 sps:$4 sm:$0xff]   ;;  %v676_v15 = vld [vmem:[#allocation5 + $0x88] ss:$16 sps:$4 sm:$0xff]   ;;  %v677_v16 = vld [vmem:[#allocation5 + $0x64] ss:$16 sps:$4 sm:$0xff]  }
  0x2e   :  { %480 = vmatpush1.bf16.msra.mxu0 %v663_v6  ;;  %521 = vmatpush1.bf16.msra.mxu1 %v664_v7  ;;  %v679_v17 = vld [vmem:[#allocation5 + $0x6c] ss:$16 sps:$4 sm:$0xff]   ;;  %v681_v18 = vld [vmem:[#allocation5 + $0x60] ss:$16 sps:$4 sm:$0xff]   ;;  %v682_v19 = vld [vmem:[#allocation5 + $0x68] ss:$16 sps:$4 sm:$0xff]  }
  0x2f   :  { %481 = vmatprep.subr.bf16.mxu0 %v665_v8  ;;  %522 = vmatprep.subr.bf16.mxu1 %v667_v9  ;;  %v683_v20 = vld [vmem:[#allocation5 + $0x44] ss:$16 sps:$4 sm:$0xff]   ;;  %v685_v21 = vld [vmem:[#allocation5 + $0x4c] ss:$16 sps:$4 sm:$0xff]   ;;  %v687_v22 = vld [vmem:[#allocation5 + $0x40] ss:$16 sps:$4 sm:$0xff]   ;;  %v130_v9 = vlaneseq }
  0x30   :  { %v688_v23 = vld [vmem:[#allocation5 + $0x48] ss:$16 sps:$4 sm:$0xff]   ;;  %v689_v24 = vld [vmem:[#allocation5 + $0x24] ss:$16 sps:$4 sm:$0xff]   ;;  %v691_v25 = vld [vmem:[#allocation5 + $0x2c] ss:$16 sps:$4 sm:$0xff]  }
  0x31   :  { %v693_v26 = vld [vmem:[#allocation5 + $0x20] ss:$16 sps:$4 sm:$0xff]   ;;  %v694_v27 = vld [vmem:[#allocation5 + $0x28] ss:$16 sps:$4 sm:$0xff]   ;;  %v695_v28 = vld [vmem:[#allocation5 + $0x4] ss:$16 sps:$4 sm:$0xff]  }
  0x32   :  { %482 = vmatpush1.bf16.msra.mxu0 %v669_v10  ;;  %523 = vmatpush1.bf16.msra.mxu1 %v670_v11  ;;  %v697_v29 = vld [vmem:[#allocation5 + $0xc] ss:$16 sps:$4 sm:$0xff]   ;;  %v699_v30 = vld [vmem:[#allocation5] ss:$16 sps:$4 sm:$0xff]   ;;  %v700_v31 = vld [vmem:[#allocation5 + $0x8] ss:$16 sps:$4 sm:$0xff]  }
  0x33   :  { %483 = vmatprep.subr.bf16.mxu0 %v671_v12  ;;  %524 = vmatprep.subr.bf16.mxu1 %v673_v13  ;;  %v701_v32 = vld [vmem:[#allocation5 + $0x1e4] ss:$16 sps:$4 sm:$0xff]   ;;  %v703_v33 = vld [vmem:[#allocation5 + $0x1ec] ss:$16 sps:$4 sm:$0xff]   ;;  %v705_v34 = vld [vmem:[#allocation5 + $0x1e0] ss:$16 sps:$4 sm:$0xff]  }
  0x34   :  { %v706_v35 = vld [vmem:[#allocation5 + $0x1e8] ss:$16 sps:$4 sm:$0xff]   ;;  %v707_v36 = vld [vmem:[#allocation5 + $0x1c4] ss:$16 sps:$4 sm:$0xff]   ;;  %v709_v37 = vld [vmem:[#allocation5 + $0x1cc] ss:$16 sps:$4 sm:$0xff]  }
  0x35   :  { %v711_v38 = vld [vmem:[#allocation5 + $0x1c0] ss:$16 sps:$4 sm:$0xff]   ;;  %v712_v39 = vld [vmem:[#allocation5 + $0x1c8] ss:$16 sps:$4 sm:$0xff]   ;;  %v713_v40 = vld [vmem:[#allocation5 + $0x1a4] ss:$16 sps:$4 sm:$0xff]  }
  0x36   :  { %484 = vmatpush1.bf16.msra.mxu0 %v675_v14  ;;  %525 = vmatpush1.bf16.msra.mxu1 %v676_v15  ;;  %v715_v41 = vld [vmem:[#allocation5 + $0x1ac] ss:$16 sps:$4 sm:$0xff]   ;;  %v717_v42 = vld [vmem:[#allocation5 + $0x1a0] ss:$16 sps:$4 sm:$0xff]   ;;  %v718_v43 = vld [vmem:[#allocation5 + $0x1a8] ss:$16 sps:$4 sm:$0xff]  }
  0x37   :  { %485 = vmatprep.subr.bf16.mxu0 %v677_v16  ;;  %526 = vmatprep.subr.bf16.mxu1 %v679_v17  ;;  %v719_v44 = vld [vmem:[#allocation5 + $0x184] ss:$16 sps:$4 sm:$0xff]   ;;  %v721_v45 = vld [vmem:[#allocation5 + $0x18c] ss:$16 sps:$4 sm:$0xff]   ;;  %v723_v49 = vld [vmem:[#allocation5 + $0x180] ss:$16 sps:$4 sm:$0xff]  }
  0x38   :  { %v54_v46 = vld [vmem:[#allocation2] sm:$0xff]  ;;  %v56_v47 = vld [vmem:[#allocation2 + $0x8] sm:$0xff]  ;;  %v59_v48 = vld [vmem:[#allocation2 + $0x10] sm:$0xff]  ;;  %v131_v10 = vshrl.u32 %v130_v9, 7  ;;  %s842_s0 = smov [#allocation8]  }
  0x39   :  { %v724_v50 = vld [vmem:[#allocation5 + $0x188] ss:$16 sps:$4 sm:$0xff]   ;;  %v57_v51 = vadd.bf16 %v56_v47, %v54_v46  ;;  %v725_v52 = vld [vmem:[#allocation5 + $0x164] ss:$16 sps:$4 sm:$0xff]   ;;  %v727_v53 = vld [vmem:[#allocation5 + $0x16c] ss:$16 sps:$4 sm:$0xff]  }
  0x3a   :  { %486 = vmatpush1.bf16.msra.mxu0 %v681_v18  ;;  %527 = vmatpush1.bf16.msra.mxu1 %v682_v19  ;;  %v62_v54 = vld [vmem:[#allocation2 + $0x18] sm:$0xff]  ;;  %v729_v56 = vld [vmem:[#allocation5 + $0x160] ss:$16 sps:$4 sm:$0xff]   ;;  %v731_v59 = vld [vmem:[#allocation5 + $0x144] ss:$16 sps:$4 sm:$0xff]   ;;  %v132_v11 = vsub.s32 0, %v131_v10 }
  0x3b   :  { %487 = vmatprep.subr.bf16.mxu0 %v683_v20  ;;  %528 = vmatprep.subr.bf16.mxu1 %v685_v21  ;;  %v60_v55 = vadd.bf16 %v59_v48, %v57_v51  ;;  %v730_v57 = vld [vmem:[#allocation5 + $0x168] ss:$16 sps:$4 sm:$0xff]   ;;  %v733_v60 = vld [vmem:[#allocation5 + $0x14c] ss:$16 sps:$4 sm:$0xff]   ;;  %v735_v62 = vld [vmem:[#allocation5 + $0x140] ss:$16 sps:$4 sm:$0xff]  }
  0x3c   :  { %v736_v63 = vld [vmem:[#allocation5 + $0x148] ss:$16 sps:$4 sm:$0xff]   ;;  %v737_v0 = vld [vmem:[#allocation5 + $0x124] ss:$16 sps:$4 sm:$0xff]   ;;  %v739_v1 = vld [vmem:[#allocation5 + $0x12c] ss:$16 sps:$4 sm:$0xff]  }
  0x3d   :  { %v63_v58 = vadd.bf16 %v62_v54, %v60_v55  ;;  %v741_v2 = vld [vmem:[#allocation5 + $0x120] ss:$16 sps:$4 sm:$0xff]   ;;  %v742_v3 = vld [vmem:[#allocation5 + $0x128] ss:$16 sps:$4 sm:$0xff]   ;;  %v743_v4 = vld [vmem:[#allocation5 + $0x104] ss:$16 sps:$4 sm:$0xff]  }
  0x3e   :  { %488 = vmatpush1.bf16.msra.mxu0 %v687_v22  ;;  %529 = vmatpush1.bf16.msra.mxu1 %v688_v23  ;;  %v745_v5 = vld [vmem:[#allocation5 + $0x10c] ss:$16 sps:$4 sm:$0xff]   ;;  %v747_v6 = vld [vmem:[#allocation5 + $0x100] ss:$16 sps:$4 sm:$0xff]   ;;  %v748_v7 = vld [vmem:[#allocation5 + $0x108] ss:$16 sps:$4 sm:$0xff]  }
  0x3f   :  { %489 = vmatprep.subr.bf16.mxu0 %v689_v24  ;;  %530 = vmatprep.subr.bf16.mxu1 %v691_v25  ;;  %v580_v61 = vcombine.high %v63_v58, %v63_v58  ;;  %v579_v8 = vcombine.low %v63_v58, %v63_v58  ;;  %v140_v12 = vsub.s32 2, %v131_v10  ;;  %v128_v13 = vld [vmem:[#allocation7] sm:$0xf]  ;;  %v136_v14 = vsub.s32 1, %v131_v10  ;;  %s569_s2 = sshll.u32 %s842_s0, 4  ;;  %s570_s2 = int_to_ptr.vmem [resolvable:$true] %s569_s2 }
  0x40   :  { %v144_v15 = vsub.s32 3, %v131_v10  ;;  %v133_v16 = vrot.slane %v128_v13, %v132_v11  ;;  %s809_s30 = scalar_lea.vmem %s570_s2, 512  ;;  %p814_p2 = scmp.lt.s32.totalorder %s570_s2, %s570_s2 }
  0x41   :  { %509 = vmatprep.mubr.bf16.mxu0 %v580_v61  ;;  %550 = vmatprep.mubr.bf16.mxu1 %v580_v61  ;;  %v141_v17 = vrot.slane %v128_v13, %v140_v12  ;;  %v137_v18 = vrot.slane %v128_v13, %v136_v14  ;;  %p810_p1 = scmp.ne.s32.totalorder %s570_s2, %s809_s30  ;;  %p815_p3 = scmp.lt.s32.totalorder %s809_s30, %s809_s30 }
  0x42   :  { %490 = vmatpush1.bf16.msra.mxu0 %v693_v26  ;;  %531 = vmatpush1.bf16.msra.mxu1 %v694_v27  ;;  %v145_v19 = vrot.slane %v128_v13, %v144_v15 }
  0x43   :  { %491 = vmatprep.subr.bf16.mxu0 %v695_v28  ;;  %532 = vmatprep.subr.bf16.mxu1 %v697_v29  ;;  %p816_p4 = por %p815_p3, %p814_p2 }
  0x45   :  { %p817_p5 = pnand %p816_p4, %p810_p1 }
  0x46   :  { %492 = vmatpush1.bf16.msra.mxu0 %v699_v30  ;;  %533 = vmatpush1.bf16.msra.mxu1 %v700_v31 }
  0x47   :  { %493 = vmatprep.subr.bf16.mxu0 %v701_v32  ;;  %534 = vmatprep.subr.bf16.mxu1 %v703_v33 }
  0x4a   :  { %494 = vmatpush2.bf16.msra.mxu0 %v705_v34  ;;  %535 = vmatpush2.bf16.msra.mxu1 %v706_v35 }
  0x4b   :  { %495 = vmatprep.subr.bf16.mxu0 %v707_v36  ;;  %536 = vmatprep.subr.bf16.mxu1 %v709_v37 }
  0x4e   :  { %496 = vmatpush2.bf16.msra.mxu0 %v711_v38  ;;  %537 = vmatpush2.bf16.msra.mxu1 %v712_v39 }
  0x4f   :  { %497 = vmatprep.subr.bf16.mxu0 %v713_v40  ;;  %538 = vmatprep.subr.bf16.mxu1 %v715_v41 }
  0x52   :  { %498 = vmatpush2.bf16.msra.mxu0 %v717_v42  ;;  %539 = vmatpush2.bf16.msra.mxu1 %v718_v43 }
  0x53   :  { %499 = vmatprep.subr.bf16.mxu0 %v719_v44  ;;  %540 = vmatprep.subr.bf16.mxu1 %v721_v45 }
  0x56   :  { %500 = vmatpush2.bf16.msra.mxu0 %v723_v49  ;;  %541 = vmatpush2.bf16.msra.mxu1 %v724_v50 }
  0x57   :  { %501 = vmatprep.subr.bf16.mxu0 %v725_v52  ;;  %542 = vmatprep.subr.bf16.mxu1 %v727_v53 }
  0x5a   :  { %502 = vmatpush2.bf16.msra.mxu0 %v729_v56  ;;  %543 = vmatpush2.bf16.msra.mxu1 %v730_v57 }
  0x5b   :  { %503 = vmatprep.subr.bf16.mxu0 %v731_v59  ;;  %544 = vmatprep.subr.bf16.mxu1 %v733_v60 }
  0x5e   :  { %504 = vmatpush2.bf16.msra.mxu0 %v735_v62  ;;  %545 = vmatpush2.bf16.msra.mxu1 %v736_v63 }
  0x5f   :  { %505 = vmatprep.subr.bf16.mxu0 %v737_v0  ;;  %546 = vmatprep.subr.bf16.mxu1 %v739_v1 }
  0x62   :  { %506 = vmatpush2.bf16.msra.mxu0 %v741_v2  ;;  %547 = vmatpush2.bf16.msra.mxu1 %v742_v3 }
  0x63   :  { %507 = vmatprep.subr.bf16.mxu0 %v743_v4  ;;  %548 = vmatprep.subr.bf16.mxu1 %v745_v5 }
  0x66   :  { %508 = vmatpush2.bf16.msra.mxu0 %v747_v6  ;;  %549 = vmatpush2.bf16.msra.mxu1 %v748_v7 }
  0x69   :  { %510 = vmatmul.mubr.bf16.vlgmr.msra.gmra.mxu0 %v579_v8  ;;  %551 = vmatmul.mubr.bf16.vlgmr.msra.gmra.mxu1 %v579_v8 }
 0x129   :  { %v511_v20 = vpop.f32.mrf.mxu0  ;;  %v552_v21 = vpop.f32.mrf.mxu1 }
 0x12a   :  { %v512_v22 = vadd.f32 %v511_v20, %v133_v16  ;;  %v553_v23 = vadd.f32 %v552_v21, %v141_v17 }
 0x12b   :  { %v513_v24 = vpop.f32.mrf.mxu0  ;;  %v554_v25 = vpop.f32.mrf.mxu1 }
 0x12c   :  { %559 = vst [vmem:[#allocation8] sm:$0xff] %v512_v22  ;;  %561 = vst [vmem:[#allocation8 + $0x10] sm:$0xff] %v553_v23  ;;  %v514_v26 = vadd.f32 %v513_v24, %v137_v18  ;;  %v555_v27 = vadd.f32 %v554_v25, %v145_v19 }
 0x12d   :  { %v515_v28 = vpop.f32.mrf.mxu0  ;;  %v556_v29 = vpop.f32.mrf.mxu1 }
 0x12e   :  { %560 = vst [vmem:[#allocation8 + $0x8] sm:$0xff] %v514_v26  ;;  %562 = vst [vmem:[#allocation8 + $0x18] sm:$0xff] %v555_v27 }
 0x12f   :  { %v516_v30 = vpop.f32.mrf.mxu0  ;;  %v557_v31 = vpop.f32.mrf.mxu1 }
 0x130   :  { %820 = shalt.err (!%p817_p5)
}
 0x131   :  { %572 = dma.vmem_to_hbm [thread:$0]  %s570_s2, 512, %s878_s3, [#allocation4]  }
 0x132   :  { %833 = dma.done.wait [#allocation4], 512  }
 0x133   :  { %834 = vsyncadd [#allocation4], 4294966784 }
 0x134   :  { %576 = vsyncpa [#allocation3], 1 }
 0x135   :  { %577 = vsyncpa [#allocation6], 1 }
 0x136   :  { %578 = vsyncpa [#allocation4], 1 }

</bundles_post_ra>
